<compile_context>
chip_gen: v7x
topology: tpu7x:2x2x1
jax: 0.10.0
libtpu: 0.0.40
codegen_flags: <defaults>
</compile_context>

<pallas_src>
import jax
import jax.numpy as jnp
from jax.experimental import pallas as pl
from jax.experimental.pallas import tpu as pltpu

LANE = 128
SUBLANE = 8


def _cdiv(a, b):
    return -(-a // b)


def _round_up(a, b):
    return _cdiv(a, b) * b


def _default_n_split():
    # Only v7x has 2 TensorCores sharing chip HBM; on single-TC chips (v5e,
    # v6e) the extra "parallel" split axis is a serial loop that can force an
    # otherwise-avoidable masked tail chunk, so default it off there.
    try:
        kind = jax.devices()[0].device_kind.lower()
    except Exception:
        return 1
    return 2 if "v7" in kind else 1


def _soft_iou_ref(midpred, target):
    """Pure-JAX reference / small-input fast path (mirrors the PyTorch forward)."""
    p = jax.nn.sigmoid(midpred.astype(jnp.float32))
    t = target.astype(jnp.float32)
    axes = tuple(range(1, midpred.ndim))
    inter = jnp.sum(p * t, axis=axes)
    ps = jnp.sum(p, axis=axes)
    ts = jnp.sum(t, axis=axes)
    smooth = 0.0
    iou = (inter + smooth) / (ps + ts - inter + smooth)
    return 1.0 - jnp.mean(iou)


def _make_kernel(tr, chunks_per_split, split, n_valid, need_mask, approx_sigmoid):
    """Build the kernel with static tiling params baked in via closure."""
    total_chunks = split * chunks_per_split
    # The masked branch only ever executes on the globally-last chunk, so its
    # starting row is a compile-time constant.
    last_row0 = (total_chunks - 1) * tr
    full_rows = n_valid // LANE          # fully-valid rows of the flat array
    rem = n_valid % LANE                 # valid lanes in row `full_rows`

    def kernel(pred_ref, targ_ref, inter_ref, psum_ref, tsum_ref):
        # grid = (batch, split, chunk); chunk is the (reduction) inner axis.
        c = pl.program_id(2)

        @pl.when(c == 0)
        def _():
            inter_ref[...] = jnp.zeros_like(inter_ref)
            psum_ref[...] = jnp.zeros_like(psum_ref)
            tsum_ref[...] = jnp.zeros_like(tsum_ref)

        # Cast to f32 in-kernel (inputs are streamed in their native dtype).
        x = pred_ref[...].astype(jnp.float32)
        if approx_sigmoid:
            # sigmoid(x) = 1 / (1 + exp(-x)): exp and the approx reciprocal
            # both live on the EUP slot, which has slack at HBM-roofline
            # rates, keeping the VALU slot (the only one that can become
            # binding here, esp. for bf16 inputs) free.
            p = pl.reciprocal(1.0 + jnp.exp(-x), approx=True)
        else:
            p = jax.nn.sigmoid(x)
        t = targ_ref[...].astype(jnp.float32)

        def accumulate(pv, tv):
            # Vreg-aligned partial sums: (tr,128) -> (tr/8, 8, 128), reduce the
            # leading (vreg) axis with element-wise adds only; accumulate into
            # the resident (8,128) output blocks.  No XLU work per chunk.
            p3 = pv.reshape(tr // SUBLANE, SUBLANE, LANE)
            t3 = tv.reshape(tr // SUBLANE, SUBLANE, LANE)
            inter_ref[...] += jnp.sum(p3 * t3, axis=0)
            psum_ref[...] += jnp.sum(p3, axis=0)
            tsum_ref[...] += jnp.sum(t3, axis=0)

        if not need_mask:
            accumulate(p, t)
        else:
            # Only the globally-last chunk can contain padding / read past the
            # valid rows (guaranteed by the wrapper-side assert), so gate the
            # mask there and keep the bulk of the stream mask-free.
            is_last = jnp.logical_and(pl.program_id(1) == split - 1,
                                      c == chunks_per_split - 1)

            @pl.when(jnp.logical_not(is_last))
            def _():
                accumulate(p, t)

            @pl.when(is_last)
            def _():
                # Mask elements beyond the true flattened length (covers both
                # the lane/row pad and a partially out-of-bounds tail block,
                # whose trailing VMEM contents are undefined).  Mul-free index
                # math: rows/cols compares only.
                rows = (jax.lax.broadcasted_iota(jnp.int32, (tr, LANE), 0)
                        + last_row0)
                if rem:
                    cols = jax.lax.broadcasted_iota(jnp.int32, (tr, LANE), 1)
                    valid = (rows < full_rows) | ((rows == full_rows) & (cols < rem))
                else:
                    valid = rows < full_rows
                accumulate(jnp.where(valid, p, 0.0), jnp.where(valid, t, 0.0))

    return kernel


def g_soft_iou_loss(midpred, target, *, target_block_bytes=4 << 20,
                    n_split=None, approx_sigmoid=True,
                    min_pallas_elems=1 << 17, force_pallas=False):
    """Pallas equivalent of g_SoftLoUloss.forward(midpred, target)."""
    assert midpred.shape == target.shape
    B = midpred.shape[0]
    n = 1
    for d in midpred.shape[1:]:
        n *= int(d)
    # int32 flat index in the tail mask: one flattened batch element must fit.
    assert n < 2 ** 31

    if not force_pallas and n < min_pallas_elems:
        # Tiny tensors: pallas_call launch + per-step overhead dominates; XLA
        # fuses the reference into a couple of ops and is faster.
        return _soft_iou_ref(midpred, target)

    # Native dtype — no f32 upcast copies in HBM.
    pred2 = midpred.reshape(B, n)
    targ2 = target.reshape(B, n)

    # Row granularity so blocks match the native VMEM tiling of the narrowest
    # input dtype: f32 -> 8 rows, bf16 -> 16, int8/fp8 -> 32.
    isz_p = jnp.dtype(midpred.dtype).itemsize
    isz_t = jnp.dtype(target.dtype).itemsize
    min_isz = max(1, min(isz_p, isz_t, 4))
    max_isz = max(isz_p, isz_t)
    row_align = SUBLANE * (4 // min_isz)

    # Single (rare) pad: only when the flattened length is not lane-aligned or
    # too small to form one aligned row tile.  Pad values are irrelevant — any
    # padding is masked inside the kernel (last chunk only).
    n_pad = max(_round_up(n, LANE), row_align * LANE)
    if n_pad != n:
        pred2 = jnp.pad(pred2, ((0, 0), (0, n_pad - n)))
        targ2 = jnp.pad(targ2, ((0, 0), (0, n_pad - n)))

    R = n_pad // LANE
    pred3 = pred2.reshape(B, R, LANE)   # free reshape (row-major contiguous)
    targ3 = targ2.reshape(B, R, LANE)

    # Chunk rows so the widest input block is ~target_block_bytes (~4 MiB):
    # big enough to amortize per-step overhead, and 2 inputs x 2 buffers
    # (<= 16 MiB) still leaves headroom inside the 32 MiB scoped-VMEM limit on
    # every generation (v7x physical VMEM is only 64 MiB — do not grow blocks
    # against the 128 MiB of v5e/v6e).
    tr_bytes = max(row_align,
                   (target_block_bytes // (LANE * max_isz)) // row_align * row_align)
    tr_cap = min(tr_bytes, (R // row_align) * row_align)

    # Split the reduction axis into `split` parallel grid slots only where it
    # helps (v7x dual-TC, or user override); fall back to a single slot when
    # the input is too small to give every chunk an in-bounds start row.
    split = int(n_split) if n_split is not None else _default_n_split()
    split = max(split, 1)
    chosen = None
    while split > 1:
        tc = _round_up(max(_cdiv(R, tr_cap), split), split)
        trs = min(tr_cap, _round_up(_cdiv(R, tc), row_align))
        if (tc - 1) * trs < R:          # every chunk's first row is in-bounds
            chosen = (trs, tc)
            break
        split -= 1
    if chosen is None:
        split = 1
        chosen = (tr_cap, _cdiv(R, tr_cap))
    tr, total_chunks = chosen
    chunks_per_split = total_chunks // split

    covered = split * chunks_per_split * tr * LANE
    need_mask = covered != n
    if need_mask:
        # Invariant required by the single-masked-chunk optimization: every
        # invalid element (flat index >= n) lives in the globally-last chunk.
        assert (total_chunks - 1) * tr * LANE < n
    # NOTE: a partial tail block relies on Pallas keeping the block start at
    # chunk_id*tr and leaving the out-of-range VMEM rows undefined (they are
    # zeroed by the in-kernel mask); verified on the current JAX/libtpu.
    kernel = _make_kernel(tr, chunks_per_split, split, n, need_mask,
                          approx_sigmoid)

    def _in_map(b, s, c):
        return (b, s * chunks_per_split + c, 0)

    def _out_map(b, s, c):
        return (b, s, 0, 0)

    part_shape = jax.ShapeDtypeStruct((B, split, SUBLANE, LANE), jnp.float32)
    out_block = pl.BlockSpec((None, None, SUBLANE, LANE), _out_map)

    inter_p, psum_p, tsum_p = pl.pallas_call(
        kernel,
        out_shape=(part_shape, part_shape, part_shape),
        grid_spec=pltpu.PrefetchScalarGridSpec(
            num_scalar_prefetch=0,
            grid=(B, split, chunks_per_split),
            in_specs=[
                pl.BlockSpec((None, tr, LANE), _in_map),
                pl.BlockSpec((None, tr, LANE), _in_map),
            ],
            out_specs=[out_block, out_block, out_block],
        ),
        compiler_params=pltpu.CompilerParams(
            dimension_semantics=("parallel", "parallel", "arbitrary"),
            vmem_limit_bytes=32 * 1024 * 1024,
        ),
        cost_estimate=pl.CostEstimate(
            flops=6 * B * R * LANE,
            transcendentals=2 * B * R * LANE,
            bytes_accessed=(pred3.size * isz_p + targ3.size * isz_t
                            + 3 * B * split * SUBLANE * LANE * 4),
        ),
    )(pred3, targ3)

    # Tiny JAX glue: tree-reduce the (split, 8, 128) partials, IoU, mean.
    inter = jnp.sum(inter_p, axis=(1, 2, 3))
    psum = jnp.sum(psum_p, axis=(1, 2, 3))
    tsum = jnp.sum(tsum_p, axis=(1, 2, 3))
    smooth = 0.0   # matches the PyTorch module (smooth = 0.0)
    iou = (inter + smooth) / (psum + tsum - inter + smooth)
    return 1.0 - jnp.mean(iou)


if __name__ == "__main__":
    key = jax.random.PRNGKey(0)
    k1, k2, k3, k4 = jax.random.split(key, 4)

    # Case 1: baseline small NCHW, f32, lane-aligned (no pad, no mask).
    # Exact sigmoid to validate the pipeline tightly against the reference.
    midpred = jax.random.normal(k1, (2, 4, 16, 16), dtype=jnp.float32)
    target = (jax.random.uniform(k2, (2, 4, 16, 16)) > 0.5).astype(jnp.float32)
    loss = jax.block_until_ready(
        g_soft_iou_loss(midpred, target, force_pallas=True, approx_sigmoid=False))
    ref = _soft_iou_ref(midpred, target)
    assert jnp.allclose(loss, ref, atol=1e-5, rtol=1e-5), ("case1", loss, ref)

    # Case 2: B=1, larger spatial, explicit 2-way split (dual-TC path) and
    # EUP approx-reciprocal sigmoid.
    midpred2 = jax.random.normal(k3, (1, 8, 64, 64), dtype=jnp.float32)
    target2 = (jax.random.uniform(k4, (1, 8, 64, 64)) > 0.5).astype(jnp.float32)
    loss2 = jax.block_until_ready(
        g_soft_iou_loss(midpred2, target2, force_pallas=True, n_split=2))
    ref2 = _soft_iou_ref(midpred2, target2)
    assert jnp.allclose(loss2, ref2, atol=3e-3, rtol=3e-3), ("case2", loss2, ref2)

    # Case 3: ragged (C*H*W not a multiple of 128) + bf16 inputs — pad + gated
    # last-chunk mask with native-dtype streaming.
    kk = jax.random.split(k1, 2)
    midpred3 = jax.random.normal(kk[0], (2, 3, 5, 7), dtype=jnp.bfloat16)
    target3 = (jax.random.uniform(kk[1], (2, 3, 5, 7)) > 0.5).astype(jnp.bfloat16)
    loss3 = jax.block_until_ready(
        g_soft_iou_loss(midpred3, target3, force_pallas=True))
    ref3 = _soft_iou_ref(midpred3, target3)
    assert jnp.allclose(loss3, ref3, atol=3e-3, rtol=3e-3), ("case3", loss3, ref3)

    # Case 4: lane-aligned but not tile-aligned (no pad, gated in-kernel mask,
    # explicit split with a partially out-of-bounds tail chunk).
    kk2 = jax.random.split(k2, 2)
    midpred4 = jax.random.normal(kk2[0], (2, 5, 16, 16), dtype=jnp.float32)
    target4 = (jax.random.uniform(kk2[1], (2, 5, 16, 16)) > 0.5).astype(jnp.float32)
    loss4 = jax.block_until_ready(
        g_soft_iou_loss(midpred4, target4, force_pallas=True, n_split=2))
    ref4 = _soft_iou_ref(midpred4, target4)
    assert jnp.allclose(loss4, ref4, atol=3e-3, rtol=3e-3), ("case4", loss4, ref4)

    # Case 5: auto path (small input -> pure-JAX fast path, bit-identical).
    loss5 = jax.block_until_ready(g_soft_iou_loss(midpred, target))
    assert jnp.allclose(loss5, ref, atol=1e-6, rtol=1e-6), ("case5", loss5, ref)

    print("KERNEL_OK")
</pallas_src>

<mosaic_0001>
module attributes {stable_mosaic.version = 11 : i64} {
  func.func @kernel(%arg0: i32, %arg1: i32, %arg2: i32, %arg3: memref<1x8x128xf32, #tpu.memory_space<vmem>>, %arg4: memref<1x8x128xf32, #tpu.memory_space<vmem>>, %arg5: memref<1x1x8x128xf32, #tpu.memory_space<vmem>>, %arg6: memref<1x1x8x128xf32, #tpu.memory_space<vmem>>, %arg7: memref<1x1x8x128xf32, #tpu.memory_space<vmem>>) attributes {dimension_semantics = [#tpu.dimension_semantics<parallel>, #tpu.dimension_semantics<parallel>, #tpu.dimension_semantics<arbitrary>], iteration_bounds = array<i64: 2, 1, 1>, scalar_prefetch = 0 : i64, scratch_operands = 0 : i64, tpu.core_type = #tpu.core_type<tc>, window_params = [{transform_indices = @transform_0, window_bounds = array<i64: 1, 8, 128>}, {transform_indices = @transform_1, window_bounds = array<i64: 1, 8, 128>}, {transform_indices = @transform_2, window_bounds = array<i64: 1, 1, 8, 128>}, {transform_indices = @transform_3, window_bounds = array<i64: 1, 1, 8, 128>}, {transform_indices = @transform_4, window_bounds = array<i64: 1, 1, 8, 128>}]} {
    %c0_i32 = arith.constant 0 : i32
    %0 = arith.cmpi eq, %arg2, %c0_i32 : i32
    %1 = arith.extui %0 : i1 to i32
    %c0_i32_0 = arith.constant 0 : i32
    %2 = arith.cmpi ne, %1, %c0_i32_0 : i32
    scf.if %2 {
      %cst_33 = arith.constant 0.000000e+00 : f32
      %36 = vector.broadcast %cst_33 : f32 to vector<8x128xf32>
      %c0_34 = arith.constant 0 : index
      %c0_35 = arith.constant 0 : index
      %c0_36 = arith.constant 0 : index
      %c0_37 = arith.constant 0 : index
      %37 = vector.load %arg5[%c0_34, %c0_35, %c0_36, %c0_37] : memref<1x1x8x128xf32, #tpu.memory_space<vmem>>, vector<1x1x8x128xf32>
      %38 = vector.shape_cast %37 : vector<1x1x8x128xf32> to vector<8x128xf32>
      %39 = vector.shape_cast %36 : vector<8x128xf32> to vector<1x1x8x128xf32>
      tpu.vector_store %arg5[%c0_34, %c0_35, %c0_36, %c0_37], %39 {strides = array<i32>} : memref<1x1x8x128xf32, #tpu.memory_space<vmem>>, vector<1x1x8x128xf32>,
      %cst_38 = arith.constant 0.000000e+00 : f32
      %40 = vector.broadcast %cst_38 : f32 to vector<8x128xf32>
      %c0_39 = arith.constant 0 : index
      %c0_40 = arith.constant 0 : index
      %c0_41 = arith.constant 0 : index
      %c0_42 = arith.constant 0 : index
      %41 = vector.load %arg6[%c0_39, %c0_40, %c0_41, %c0_42] : memref<1x1x8x128xf32, #tpu.memory_space<vmem>>, vector<1x1x8x128xf32>
      %42 = vector.shape_cast %41 : vector<1x1x8x128xf32> to vector<8x128xf32>
      %43 = vector.shape_cast %40 : vector<8x128xf32> to vector<1x1x8x128xf32>
      tpu.vector_store %arg6[%c0_39, %c0_40, %c0_41, %c0_42], %43 {strides = array<i32>} : memref<1x1x8x128xf32, #tpu.memory_space<vmem>>, vector<1x1x8x128xf32>,
      %cst_43 = arith.constant 0.000000e+00 : f32
      %44 = vector.broadcast %cst_43 : f32 to vector<8x128xf32>
      %c0_44 = arith.constant 0 : index
      %c0_45 = arith.constant 0 : index
      %c0_46 = arith.constant 0 : index
      %c0_47 = arith.constant 0 : index
      %45 = vector.load %arg7[%c0_44, %c0_45, %c0_46, %c0_47] : memref<1x1x8x128xf32, #tpu.memory_space<vmem>>, vector<1x1x8x128xf32>
      %46 = vector.shape_cast %45 : vector<1x1x8x128xf32> to vector<8x128xf32>
      %47 = vector.shape_cast %44 : vector<8x128xf32> to vector<1x1x8x128xf32>
      tpu.vector_store %arg7[%c0_44, %c0_45, %c0_46, %c0_47], %47 {strides = array<i32>} : memref<1x1x8x128xf32, #tpu.memory_space<vmem>>, vector<1x1x8x128xf32>,
    } else {
    }
    %c0 = arith.constant 0 : index
    %c0_1 = arith.constant 0 : index
    %c0_2 = arith.constant 0 : index
    %3 = vector.load %arg3[%c0, %c0_1, %c0_2] : memref<1x8x128xf32, #tpu.memory_space<vmem>>, vector<1x8x128xf32>
    %4 = vector.shape_cast %3 : vector<1x8x128xf32> to vector<8x128xf32>
    %5 = arith.negf %4 : vector<8x128xf32>
    %6 = math.exp %5 : vector<8x128xf32>
    %cst = arith.constant 1.000000e+00 : f32
    %7 = vector.broadcast %cst : f32 to vector<8x128xf32>
    %8 = arith.addf %7, %6 : vector<8x128xf32>
    %9 = arith.divf %7, %8 : vector<8x128xf32>
    %c0_3 = arith.constant 0 : index
    %c0_4 = arith.constant 0 : index
    %c0_5 = arith.constant 0 : index
    %10 = vector.load %arg4[%c0_3, %c0_4, %c0_5] : memref<1x8x128xf32, #tpu.memory_space<vmem>>, vector<1x8x128xf32>
    %11 = vector.shape_cast %10 : vector<1x8x128xf32> to vector<8x128xf32>
    %12 = vector.shape_cast %9 : vector<8x128xf32> to vector<1x8x128xf32>
    %13 = vector.shape_cast %11 : vector<8x128xf32> to vector<1x8x128xf32>
    %c0_6 = arith.constant 0 : index
    %c0_7 = arith.constant 0 : index
    %c0_8 = arith.constant 0 : index
    %c0_9 = arith.constant 0 : index
    %14 = vector.load %arg5[%c0_6, %c0_7, %c0_8, %c0_9] : memref<1x1x8x128xf32, #tpu.memory_space<vmem>>, vector<1x1x8x128xf32>
    %15 = vector.shape_cast %14 : vector<1x1x8x128xf32> to vector<8x128xf32>
    %16 = arith.mulf %12, %13 : vector<1x8x128xf32>
    %cst_10 = arith.constant dense<0.000000e+00> : vector<8x128xf32>
    %17 = vector.multi_reduction <add>, %16, %cst_10 [0] : vector<1x8x128xf32> to vector<8x128xf32>
    %18 = arith.addf %15, %17 : vector<8x128xf32>
    %c0_11 = arith.constant 0 : index
    %c0_12 = arith.constant 0 : index
    %c0_13 = arith.constant 0 : index
    %c0_14 = arith.constant 0 : index
    %19 = vector.load %arg5[%c0_11, %c0_12, %c0_13, %c0_14] : memref<1x1x8x128xf32, #tpu.memory_space<vmem>>, vector<1x1x8x128xf32>
    %20 = vector.shape_cast %19 : vector<1x1x8x128xf32> to vector<8x128xf32>
    %21 = vector.shape_cast %18 : vector<8x128xf32> to vector<1x1x8x128xf32>
    tpu.vector_store %arg5[%c0_11, %c0_12, %c0_13, %c0_14], %21 {strides = array<i32>} : memref<1x1x8x128xf32, #tpu.memory_space<vmem>>, vector<1x1x8x128xf32>,
    %c0_15 = arith.constant 0 : index
    %c0_16 = arith.constant 0 : index
    %c0_17 = arith.constant 0 : index
    %c0_18 = arith.constant 0 : index
    %22 = vector.load %arg6[%c0_15, %c0_16, %c0_17, %c0_18] : memref<1x1x8x128xf32, #tpu.memory_space<vmem>>, vector<1x1x8x128xf32>
    %23 = vector.shape_cast %22 : vector<1x1x8x128xf32> to vector<8x128xf32>
    %cst_19 = arith.constant dense<0.000000e+00> : vector<8x128xf32>
    %24 = vector.multi_reduction <add>, %12, %cst_19 [0] : vector<1x8x128xf32> to vector<8x128xf32>
    %25 = arith.addf %23, %24 : vector<8x128xf32>
    %c0_20 = arith.constant 0 : index
    %c0_21 = arith.constant 0 : index
    %c0_22 = arith.constant 0 : index
    %c0_23 = arith.constant 0 : index
    %26 = vector.load %arg6[%c0_20, %c0_21, %c0_22, %c0_23] : memref<1x1x8x128xf32, #tpu.memory_space<vmem>>, vector<1x1x8x128xf32>
    %27 = vector.shape_cast %26 : vector<1x1x8x128xf32> to vector<8x128xf32>
    %28 = vector.shape_cast %25 : vector<8x128xf32> to vector<1x1x8x128xf32>
    tpu.vector_store %arg6[%c0_20, %c0_21, %c0_22, %c0_23], %28 {strides = array<i32>} : memref<1x1x8x128xf32, #tpu.memory_space<vmem>>, vector<1x1x8x128xf32>,
    %c0_24 = arith.constant 0 : index
    %c0_25 = arith.constant 0 : index
    %c0_26 = arith.constant 0 : index
    %c0_27 = arith.constant 0 : index
    %29 = vector.load %arg7[%c0_24, %c0_25, %c0_26, %c0_27] : memref<1x1x8x128xf32, #tpu.memory_space<vmem>>, vector<1x1x8x128xf32>
    %30 = vector.shape_cast %29 : vector<1x1x8x128xf32> to vector<8x128xf32>
    %cst_28 = arith.constant dense<0.000000e+00> : vector<8x128xf32>
    %31 = vector.multi_reduction <add>, %13, %cst_28 [0] : vector<1x8x128xf32> to vector<8x128xf32>
    %32 = arith.addf %30, %31 : vector<8x128xf32>
    %c0_29 = arith.constant 0 : index
    %c0_30 = arith.constant 0 : index
    %c0_31 = arith.constant 0 : index
    %c0_32 = arith.constant 0 : index
    %33 = vector.load %arg7[%c0_29, %c0_30, %c0_31, %c0_32] : memref<1x1x8x128xf32, #tpu.memory_space<vmem>>, vector<1x1x8x128xf32>
    %34 = vector.shape_cast %33 : vector<1x1x8x128xf32> to vector<8x128xf32>
    %35 = vector.shape_cast %32 : vector<8x128xf32> to vector<1x1x8x128xf32>
    tpu.vector_store %arg7[%c0_29, %c0_30, %c0_31, %c0_32], %35 {strides = array<i32>} : memref<1x1x8x128xf32, #tpu.memory_space<vmem>>, vector<1x1x8x128xf32>,
    return
  }
  func.func @transform_0(%arg0: i32, %arg1: i32, %arg2: i32) -> (i32, i32, i32) {
    %c1_i32 = arith.constant 1 : i32
    %0 = arith.muli %arg1, %c1_i32 : i32
    %1 = arith.addi %0, %arg2 : i32
    %c0_i32 = arith.constant 0 : i32
    %c0_i32_0 = arith.constant 0 : i32
    return %arg0, %1, %c0_i32 : i32, i32, i32
  }
  func.func @transform_1(%arg0: i32, %arg1: i32, %arg2: i32) -> (i32, i32, i32) {
    %c1_i32 = arith.constant 1 : i32
    %0 = arith.muli %arg1, %c1_i32 : i32
    %1 = arith.addi %0, %arg2 : i32
    %c0_i32 = arith.constant 0 : i32
    %c0_i32_0 = arith.constant 0 : i32
    return %arg0, %1, %c0_i32 : i32, i32, i32
  }
  func.func @transform_2(%arg0: i32, %arg1: i32, %arg2: i32) -> (i32, i32, i32, i32) {
    %c0_i32 = arith.constant 0 : i32
    %c0_i32_0 = arith.constant 0 : i32
    %c0_i32_1 = arith.constant 0 : i32
    return %arg0, %arg1, %c0_i32, %c0_i32_0 : i32, i32, i32, i32
  }
  func.func @transform_3(%arg0: i32, %arg1: i32, %arg2: i32) -> (i32, i32, i32, i32) {
    %c0_i32 = arith.constant 0 : i32
    %c0_i32_0 = arith.constant 0 : i32
    %c0_i32_1 = arith.constant 0 : i32
    return %arg0, %arg1, %c0_i32, %c0_i32_0 : i32, i32, i32, i32
  }
  func.func @transform_4(%arg0: i32, %arg1: i32, %arg2: i32) -> (i32, i32, i32, i32) {
    %c0_i32 = arith.constant 0 : i32
    %c0_i32_0 = arith.constant 0 : i32
    %c0_i32_1 = arith.constant 0 : i32
    return %arg0, %arg1, %c0_i32, %c0_i32_0 : i32, i32, i32, i32
  }
}

</mosaic_0001>

<bundles_post_ra>
// kernel: tpu_custom_call.1
= control target key start
LH: loop header
LB: loop body
LE: loop exit
PB: predicated region body
PF: predicated region fallthrough
CT: control target
= control target key end

     0   :  { %s1203_s0 = inlined_call_operand.hbm [shape: f32[2,8,128], index: 0, kind: input, shape index: {}]   ;;  %s1204_s1 = inlined_call_operand.hbm [shape: f32[2,8,128], index: 1, kind: input, shape index: {}]   ;;  %s1205_s2 = inlined_call_operand.hbm [shape: f32[2,1,8,128], index: 2, kind: output, shape index: {0}]   ;;  %s1206_s3 = inlined_call_operand.hbm [shape: f32[2,1,8,128], index: 3, kind: output, shape index: {1}]   ;;  %s1207_s4 = inlined_call_operand.hbm [shape: f32[2,1,8,128], index: 4, kind: output, shape index: {2}]  }
   0x1   :  { %1212 = sst [smem:[#allocation15_spill]] %s1203_s0 }
   0x2   :  { %10 = vsyncpa [#allocation3], 0 }
   0x3   :  { %12 = vsyncpa [#allocation3 + $0x1], 0 }
   0x4   :  { %13 = vsyncpa [#allocation6], 0 }
   0x5   :  { %15 = vsyncpa [#allocation6 + $0x1], 0 }
   0x6   :  { %16 = vsyncpa [#allocation4], 0 }
   0x7   :  { %18 = vsyncpa [#allocation4 + $0x1], 0 }
   0x8   :  { %19 = vsyncpa [#allocation9], 0 }
   0x9   :  { %21 = vsyncpa [#allocation9 + $0x1], 0  ;;  %s903_s15 = smov 0   ;;  %s905_s16 = smov 0  }
   0xa   :  { %s907_s17 = smov 0   ;;  %s909_s18 = smov 0  }
   0xb   :  { %s911_s19 = smov 0   ;;  %s913_s20 = smov 0  }
   0xc LB: > { %s934_s21 = sadd.s32 4294967295, %s871_s20   ;;  %s1208_s22 = sadd.s32 4294967294, %s871_s20   ;;  %s871_s20 = sphi %s913_s20, %s27_s20   ;;  %s867_s19 = sphi %s911_s19, %s1233_s19   ;;  %s863_s18 = sphi %s909_s18, %s1232_s18   ;;  %s859_s17 = sphi %s907_s17, %s1231_s17   ;;  %s855_s16 = sphi %s905_s16, %s1230_s16   ;;  %s851_s15 = sphi %s903_s15, %s1229_s15  }
   0xd   : > { %s46_s23 = sadd.s32 1, %s867_s19  ;;  %s57_s24 = sadd.s32 1, %s859_s17 }
   0xe   : > { %p48_p0 = scmp.ge.s32.totalorder %s46_s23, 2  ;;  %p64_p1 = scmp.ne.s32.totalorder %s859_s17, %s855_s16 }
   0xf   : > { %p65_p2 = scmp.eq.s32.totalorder %s871_s20, 0  ;;  %p70_p3 = scmp.ne.s32.totalorder %s855_s16, %s851_s15 }
  0x10   : > { %s1235_s23 = smov (%p48_p0, %s46_s23), 0  ;;  %p71_p5 = scmp.eq.s32.totalorder %s934_s21, 0 }
  0x11   : > { %p946_p4 = por %p65_p2, %p64_p1  ;;  %s52_s26 = ssub.s32 %s867_s19, %s1235_s23 }
  0x12   : > { %p126_p6 = scmp.eq.s32.totalorder %s934_s21, 1  ;;  %p55_p7 = scmp.eq.s32.totalorder %s52_s26, 0 }
  0x13   : > { %p954_p8 = por %p71_p5, %p70_p3  ;;  %p132_p10 = scmp.eq.s32.totalorder %s1208_s22, 1 }
  0x14   : > { %p958_p9 = por %p126_p6, %p64_p1  ;;  %p610_p13 = scmp.lt.s32.totalorder %s871_s20, 2 }
  0x15   : > { %s1214_s27 = scalar_select %p954_p8, 1, 0 }
  0x16   : > { %s1215_s28 = scalar_select %p958_p9, 1, 0 }
  0x17   : > { %s965_s29 = scalar_select %p55_p7, %s859_s17, %s57_s24  }
  0x18   : > { %p967_p11 = por %p132_p10, %p70_p3  ;;  %s974_s5 = sand.u32 1, %s859_s17  }
  0x19   : > { %s564_s6 = sshll.u32 %s974_s5, 3  ;;  %s565_s7 = sshll.u32 %s867_s19, 7 }
  0x1a   : > { %s1216_s30 = scalar_select %p967_p11, 1, 0 }
  0x1b   : > { %s1217_s0 = sld [smem:[#allocation15_spill]]  ;;  %s212_s11 = scalar_lea.vmem [#allocation2], %s564_s6 }
  0x1c   : > { %s221_s12 = sshll.u32 %s212_s11, 4  ;;  %p991_p0 = pnand %p610_p13, %p946_p4  ;;  %s987_s12 = int_to_ptr.vmem [resolvable:$true] %s221_s12 }
  0x1d   : > { %s209_s14 = scalar_lea.sflag [#allocation3], %s974_s5 }
  0x1e   : > { %p667_p5 = pneg %p991_p0 }
  0x21   : > { %s983_s10 = scalar_lea.hbm %s1217_s0, %s565_s7  ;;  %s670_s25 = scalar_lea.hbm %s1217_s0, 256 }
  0x22   : > { %s665_s24 = scalar_lea.hbm %s983_s10, 128  ;;  %p671_p4 = scmp.lt.u32.totalorder %s983_s10, %s1217_s0 }
  0x23   : > { %p666_p3 = scmp.ne.s32.totalorder %s983_s10, %s665_s24  ;;  %p672_p10 = scmp.lt.u32.totalorder %s670_s25, %s665_s24 }
  0x24   : > { %p674_p12 = scmp.lt.u32.totalorder %s665_s24, %s983_s10 }
  0x25   : > { %p668_p6 = pnand %p667_p5, %p666_p3  ;;  %p673_p13 = por %p672_p10, %p671_p4 }
  0x27   : > { %p669_p7 = pneg %p668_p6  ;;  %p675_p1 = por %p674_p12, %p673_p13 }
  0x29   : > { %p676_p2 = pnand %p675_p1, %p669_p7 }
  0x2b   : > { %679 = shalt.err (!%p676_p2)
}
  0x2c   : > { %s680_s22 = scalar_lea.vmem %s987_s12, 128  ;;  %s873_s26 = smov [#allocation2]  }
  0x2d   : > { %p681_p3 = scmp.ne.s32.totalorder %s987_s12, %s680_s22  ;;  %s685_s8 = sshll.u32 %s873_s26, 4  ;;  %s686_s8 = int_to_ptr.vmem [resolvable:$false] %s685_s8 }
  0x2e   : > { %s687_s9 = scalar_lea.vmem %s686_s8, 256  ;;  %p688_p9 = scmp.lt.s32.totalorder %s987_s12, %s686_s8 }
  0x2f   : > { %p683_p6 = pnand %p681_p3, %p667_p5  ;;  %p689_p4 = scmp.lt.s32.totalorder %s687_s9, %s680_s22 }
  0x31   : > { %p684_p11 = pneg %p683_p6  ;;  %p690_p10 = por %p689_p4, %p688_p9 }
  0x33   : > { %p691_p12 = pnand %p690_p10, %p684_p11 }
  0x35   : > { %694 = shalt.err (!%p691_p12)
}
  0x36   : > { %596 = dma.hbm_to_vmem [thread:$0]  (!%p991_p0), %s983_s10, 128, %s987_s12, %s209_s14  }
  0x37   : > { %p1219_p1 = scmp.lt.s32.totalorder %s871_s20, 3  ;;  %p1220_p2 = scmp.ge.s32.totalorder %s871_s20, 1 }
  0x38   : > { %s1036_s11 = scalar_lea.hbm %s1204_s1, %s565_s7  ;;  %s232_s26 = scalar_lea.vmem [#allocation5], %s564_s6 }
  0x39   : > { %p1027_p7 = pnand %p1220_p2, %p1219_p1  ;;  %s241_s8 = sshll.u32 %s232_s26, 4  ;;  %s242_s8 = int_to_ptr.vmem [resolvable:$true] %s241_s8 }
  0x3a   : > { %s229_s10 = scalar_lea.sflag [#allocation6], %s974_s5  ;;  %s695_s12 = scalar_lea.hbm %s1036_s11, 128 }
  0x3b   : > { %s1221_s24 = scalar_select %p1027_p7, 1, 0 }
  0x3c   : > { %p696_p9 = scmp.ne.s32.totalorder %s1036_s11, %s695_s12  ;;  %s700_s7 = scalar_lea.hbm %s1204_s1, 256 }
  0x3d   : > { %p701_p3 = scmp.lt.u32.totalorder %s1036_s11, %s1204_s1  ;;  %p702_p6 = scmp.lt.u32.totalorder %s700_s7, %s695_s12 }
  0x3e   : > { %p698_p11 = pnand %p696_p9, %p667_p5  ;;  %p704_p10 = scmp.lt.u32.totalorder %s695_s12, %s1036_s11 }
  0x3f   : > { %p703_p4 = por %p702_p6, %p701_p3 }
  0x40   : > { %p699_p13 = pneg %p698_p11 }
  0x41   : > { %p705_p12 = por %p704_p10, %p703_p4 }
  0x43   : > { %p706_p1 = pnand %p705_p12, %p699_p13 }
  0x45   : > { %709 = shalt.err (!%p706_p1)
}
  0x46   : > { %s710_s5 = scalar_lea.vmem %s242_s8, 128  ;;  %s874_s6 = smov [#allocation5]  }
  0x47   : > { %p711_p2 = scmp.ne.s32.totalorder %s242_s8, %s710_s5  ;;  %s715_s26 = sshll.u32 %s874_s6, 4  ;;  %s716_s26 = int_to_ptr.vmem [resolvable:$false] %s715_s26 }
  0x48   : > { %s717_s14 = scalar_lea.vmem %s716_s26, 256  ;;  %p718_p8 = scmp.lt.s32.totalorder %s242_s8, %s716_s26 }
  0x49   : > { %p713_p9 = pnand %p711_p2, %p667_p5  ;;  %p719_p7 = scmp.lt.s32.totalorder %s717_s14, %s710_s5 }
  0x4b   : > { %p714_p11 = pneg %p713_p9  ;;  %p720_p3 = por %p719_p7, %p718_p8 }
  0x4d   : > { %p721_p6 = pnand %p720_p3, %p714_p11 }
  0x4f   : > { %724 = shalt.err (!%p721_p6)
}
  0x50   : > { %599 = dma.hbm_to_vmem [thread:$0]  (!%p991_p0), %s1036_s11, 128, %s242_s8, %s229_s10  }
  0x51   : > { %p1222_p13 = scmp.ne.s32.totalorder %s1221_s24, 0 }
  0x52   : > { %s1063_s12 = sand.u32 (!%p1222_p13), 1, %s855_s16   ;;  %p1223_p8 = scmp.ne.s32.totalorder (!%p1222_p13), %s1214_s27, 0 }
  0x53   : > { %250 = sbr.rel (%p1222_p13) target bundleno = 180 (0xb4), region = 28  ;;  %s1066_s9 = sshll.u32 (!%p1222_p13), %s1063_s12, 3 }
  0x54   : > { %s253_s7 = scalar_lea.sflag (!%p1222_p13), [#allocation3], %s1063_s12  ;;  %s256_s22 = scalar_lea.vmem (!%p1222_p13), [#allocation2], %s1066_s9 }
  0x5a   : > { %834 = dma.done.wait (%p1223_p8), %s253_s7, 128  }
  0x5b   : > { %836 = vsyncadd (%p1223_p8), %s253_s7, 4294967168  ;;  %s262_s13 = scalar_lea.sflag [#allocation6], %s1063_s12  ;;  %s265_s24 = scalar_lea.vmem [#allocation5], %s1066_s9 }
  0x5c   : > { %838 = dma.done.wait (%p1223_p8), %s262_s13, 128  }
  0x5d   : > { %840 = vsyncadd (%p1223_p8), %s262_s13, 4294967168  ;;  %v314_v0 = vld [vmem:[%s256_s22] sm:$0xff]  ;;  %v321_v1 = vld [vmem:[%s265_s24] sm:$0xff]  ;;  %s304_s11 = scalar_lea.vmem [#allocation10], %s1066_s9  ;;  %s340_s8 = sand.u32 1, %s934_s21  }
  0x5e   : > { %v574_v2 = vmul.f32 -1.442695, %v314_v0  ;;  %334 = vst [vmem:[%s304_s11] sm:$0xff] %v321_v1  ;;  %s388_s10 = sshll.u32 %s304_s11, 4  ;;  %s578_s25 = sshll.u32 %s863_s18, 7  ;;  %s1084_s10 = int_to_ptr.vmem [resolvable:$true] %s388_s10 }
  0x5f   : > { %s297_s27 = scalar_lea.vmem [#allocation8], %s1066_s9  ;;  %s1211_s6 = scalar_lea.vmem [#allocation7], %s1066_s9 }
  0x60   : > { %661 = vpow2.f32 %v574_v2  ;;  %s374_s5 = sshll.u32 %s297_s27, 4  ;;  %s360_s26 = sshll.u32 %s1211_s6, 4  ;;  %s1094_s5 = int_to_ptr.vmem [resolvable:$true] %s374_s5  ;;  %s1106_s26 = int_to_ptr.vmem [resolvable:$true] %s360_s26 }
  0x61   : > { %s1092_s22 = scalar_lea.hbm %s1206_s3, %s578_s25  ;;  %s1099_s18 = scalar_lea.hbm %s1207_s4, %s578_s25 }
  0x62   : > { %s1104_s6 = scalar_lea.hbm %s1205_s2, %s578_s25  ;;  %s1108_s14 = scalar_lea.sflag [#allocation9], %s340_s8 }
  0x63   : > { %s725_s7 = scalar_lea.vmem %s1094_s5, 128  ;;  %p1224_p5 = scmp.ne.s32.totalorder %s1215_s28, 0 }
  0x64   : > { %p726_p0 = scmp.ne.s32.totalorder %s1094_s5, %s725_s7  ;;  %s875_s21 = smov [#allocation8]  }
  0x65   : > { %s729_s13 = sshll.u32 %s875_s21, 4  ;;  %s730_s13 = int_to_ptr.vmem [resolvable:$false] %s729_s13 }
  0x66   : > { %p727_p7 = pnand %p726_p0, %p1224_p5  ;;  %s731_s0 = scalar_lea.vmem %s730_s13, 256 }
  0x67   : > { %p732_p10 = scmp.lt.s32.totalorder %s1094_s5, %s730_s13  ;;  %p733_p12 = scmp.lt.s32.totalorder %s731_s0, %s725_s7 }
  0x68   : > { %p728_p4 = pneg %p727_p7 }
  0x69   : > { %p734_p1 = por %p733_p12, %p732_p10 }
  0x6a   : > { %v662_v3 = vpop.eup %661 }
  0x6b   : > { %v318_v4 = vadd.f32 1.0, %v662_v3  ;;  %p735_p2 = pnand %p734_p1, %p728_p4 }
  0x6d   : > { %663 = vrcp.f32 %v318_v4 }
  0x77   : > { %v664_v5 = vpop.eup %663 }
  0x78   : > { %v323_v6 = vmul.f32 %v664_v5, %v321_v1  ;;  %330 = vst [vmem:[%s297_s27] sm:$0xff] %v664_v5 }
  0x79   : > { %738 = shalt.err (!%p735_p2)
}
  0x7a   : > { %s739_s8 = scalar_lea.hbm %s1092_s22, 128  ;;  %s743_s24 = scalar_lea.hbm %s1206_s3, 256 }
  0x7b   : > { %p740_p9 = scmp.ne.s32.totalorder %s1092_s22, %s739_s8  ;;  %p744_p6 = scmp.lt.u32.totalorder %s1092_s22, %s1206_s3 }
  0x7c   : > { %p745_p13 = scmp.lt.u32.totalorder %s743_s24, %s739_s8  ;;  %p747_p0 = scmp.lt.u32.totalorder %s739_s8, %s1092_s22 }
  0x7d   : > { %p741_p11 = pnand %p740_p9, %p1224_p5 }
  0x7e   : > { %p746_p8 = por %p745_p13, %p744_p6 }
  0x7f   : > { %p742_p3 = pneg %p741_p11 }
  0x80   : > { %p748_p7 = por %p747_p0, %p746_p8 }
  0x82   : > { %p749_p4 = pnand %p748_p7, %p742_p3 }
  0x84   : > { %752 = shalt.err (!%p749_p4)
}
  0x85   : > { %588 = dma.vmem_to_hbm [thread:$0]  (%p1224_p5), %s1094_s5, 128, %s1092_s22, %s1108_s14  }
  0x86   : > { %s1225_s0 = scalar_lea.vmem [#allocation7], %s1066_s9  ;;  %s753_s7 = scalar_lea.vmem %s1084_s10, 128 }
  0x87   : > { %326 = vst [vmem:[%s1225_s0] sm:$0xff] %v323_v6  ;;  %p754_p10 = scmp.ne.s32.totalorder %s1084_s10, %s753_s7  ;;  %s876_s13 = smov [#allocation10]  }
  0x88   : > { %s757_s8 = sshll.u32 %s876_s13, 4  ;;  %s758_s8 = int_to_ptr.vmem [resolvable:$false] %s757_s8 }
  0x89   : > { %p755_p12 = pnand %p754_p10, %p1224_p5  ;;  %s759_s25 = scalar_lea.vmem %s758_s8, 256 }
  0x8a   : > { %p760_p2 = scmp.lt.s32.totalorder %s1084_s10, %s758_s8  ;;  %p761_p9 = scmp.lt.s32.totalorder %s759_s25, %s753_s7 }
  0x8b   : > { %p756_p1 = pneg %p755_p12 }
  0x8c   : > { %p762_p11 = por %p761_p9, %p760_p2 }
  0x8e   : > { %p763_p3 = pnand %p762_p11, %p756_p1 }
  0x90   : > { %766 = shalt.err (!%p763_p3)
}
  0x91   : > { %s767_s9 = scalar_lea.hbm %s1099_s18, 128  ;;  %s771_s27 = scalar_lea.hbm %s1207_s4, 256 }
  0x92   : > { %p768_p6 = scmp.ne.s32.totalorder %s1099_s18, %s767_s9  ;;  %p772_p0 = scmp.lt.u32.totalorder %s1099_s18, %s1207_s4 }
  0x93   : > { %p773_p7 = scmp.lt.u32.totalorder %s771_s27, %s767_s9  ;;  %p775_p10 = scmp.lt.u32.totalorder %s767_s9, %s1099_s18 }
  0x94   : > { %p769_p13 = pnand %p768_p6, %p1224_p5 }
  0x95   : > { %p774_p4 = por %p773_p7, %p772_p0 }
  0x96   : > { %p770_p8 = pneg %p769_p13 }
  0x97   : > { %p776_p12 = por %p775_p10, %p774_p4 }
  0x99   : > { %p777_p1 = pnand %p776_p12, %p770_p8 }
  0x9b   : > { %780 = shalt.err (!%p777_p1)
}
  0x9c   : > { %589 = dma.vmem_to_hbm [thread:$0]  (%p1224_p5), %s1084_s10, 128, %s1099_s18, %s1108_s14  }
  0x9d   : > { %s336_s21 = scalar_lea.sflag [#allocation4], %s1063_s12  ;;  %s781_s0 = scalar_lea.vmem %s1106_s26, 128 }
  0x9e   : > { %p782_p2 = scmp.ne.s32.totalorder %s1106_s26, %s781_s0  ;;  %s877_s7 = smov [#allocation7]  }
  0x9f   : > { %s785_s13 = sshll.u32 %s877_s7, 4  ;;  %s786_s13 = int_to_ptr.vmem [resolvable:$false] %s785_s13 }
  0xa0   : > { %p783_p9 = pnand %p782_p2, %p1224_p5  ;;  %s787_s8 = scalar_lea.vmem %s786_s13, 256 }
  0xa1   : > { %p788_p3 = scmp.lt.s32.totalorder %s1106_s26, %s786_s13  ;;  %p789_p6 = scmp.lt.s32.totalorder %s787_s8, %s781_s0 }
  0xa2   : > { %p784_p11 = pneg %p783_p9 }
  0xa3   : > { %p790_p13 = por %p789_p6, %p788_p3 }
  0xa5   : > { %p791_p8 = pnand %p790_p13, %p784_p11 }
  0xa7   : > { %794 = shalt.err (!%p791_p8)
}
  0xa8   : > { %s795_s12 = scalar_lea.hbm %s1104_s6, 128  ;;  %s799_s14 = scalar_lea.hbm %s1205_s2, 256 }
  0xa9   : > { %p796_p0 = scmp.ne.s32.totalorder %s1104_s6, %s795_s12  ;;  %p800_p10 = scmp.lt.u32.totalorder %s1104_s6, %s1205_s2 }
  0xaa   : > { %p801_p12 = scmp.lt.u32.totalorder %s799_s14, %s795_s12  ;;  %p803_p2 = scmp.lt.u32.totalorder %s795_s12, %s1104_s6 }
  0xab   : > { %p797_p7 = pnand %p796_p0, %p1224_p5 }
  0xac   : > { %p802_p1 = por %p801_p12, %p800_p10 }
  0xad   : > { %p798_p4 = pneg %p797_p7 }
  0xae   : > { %p804_p9 = por %p803_p2, %p802_p1 }
  0xb0   : > { %p805_p11 = pnand %p804_p9, %p798_p4 }
  0xb2   : > { %808 = shalt.err (!%p805_p11)
}
  0xb3   : > { %587 = dma.vmem_to_hbm [thread:$0]  (%p1224_p5), %s1106_s26, 128, %s1104_s6, %s336_s21  }
  0xb4 PF: > { %s400_s5 = sand.u32 1, %s851_s15   ;;  %p1226_p3 = scmp.ne.s32.totalorder %s1216_s30, 0 }
  0xb5   : > { %p1227_p6 = scmp.ge.s32.totalorder %s871_s20, 2  ;;  %s401_s22 = scalar_lea.sflag [#allocation4], %s400_s5 }
  0xb7   : > { %p601_p13 = pnand %p1227_p6, %p1226_p3 }
  0xb9   : > { %842 = dma.done.wait (!%p601_p13), %s401_s22, 128  }
  0xba   : > { %844 = vsyncadd (!%p601_p13), %s401_s22, 4294967168  ;;  %s1228_s27 = sadd.s32 4294967294, %s871_s20  }
  0xbb   : > { %s409_s24 = sand.u32 1, %s1228_s27  }
  0xbc   : > { %s410_s11 = scalar_lea.sflag [#allocation9], %s409_s24 }
  0xbd   : > { %846 = dma.done.wait (!%p601_p13), %s410_s11, 256  }
  0xbe   : > { %848 = vsyncadd (!%p601_p13), %s410_s11, 4294967040  ;;  %s27_s20 = sadd.s32 1, %s871_s20   ;;  %s1229_s15 = smov %s855_s16 }
  0xbf   : > { %p24_p5 = scmp.ge.s32.totalorder %s27_s20, 4   ;;  %s1230_s16 = smov %s859_s17 }
  0xc0   : > { %s1231_s17 = smov %s965_s29  ;;  %s1232_s18 = smov %s867_s19 }
  0xc1   : > { %s1233_s19 = smov %s1235_s23  ;;  %26 = sbr.rel (!%p24_p5) target bundleno = 12 (0xc), region = 122 }
  0xc8   :  { %424 = vsyncpa [#allocation3], 1 }
  0xc9   :  { %426 = vsyncpa [#allocation3 + $0x1], 1 }
  0xca   :  { %427 = vsyncpa [#allocation6], 1 }
  0xcb   :  { %429 = vsyncpa [#allocation6 + $0x1], 1 }
  0xcc   :  { %430 = vsyncpa [#allocation4], 1 }
  0xcd   :  { %432 = vsyncpa [#allocation4 + $0x1], 1 }
  0xce   :  { %433 = vsyncpa [#allocation9], 1 }
  0xcf   :  { %435 = vsyncpa [#allocation9 + $0x1], 1 }

</bundles_post_ra>
